<compile_context>
chip_gen: v7x
topology: tpu7x:2x2x1
jax: 0.10.0
libtpu: 0.0.40
codegen_flags: <defaults>
</compile_context>

<pallas_src>
import functools

import jax
import jax.numpy as jnp
from jax.experimental import pallas as pl
from jax.experimental.pallas import tpu as pltpu

HIDDEN = 500
OUT_DIM = 20
LANE = 128
BF16_SUBLANES = 16                    # bf16 packs 16 rows per vreg
DEFAULT_BLOCK_BATCH = 1024            # bigger tiles amortize ~0.35us/step
VMEM_BUDGET = 40 * 1024 * 1024        # conservative: v7x has 64 MiB per TC


def _round_up(n, m):
    return ((n + m - 1) // m) * m


def _cdiv(a, b):
    return (a + b - 1) // b


# ---------------------------------------------------------------------------
# Kernels
# ---------------------------------------------------------------------------

def _mlp_kernel(x_ref, w1_ref, b1_ref, w2_ref, b2_ref, o_ref):
    """relu(x @ w1 + b1) @ w2 + b2 with all weights VMEM-resident."""
    # Cast the streamed x tile to bf16 *inside* the kernel (no wrapper pass).
    x = x_ref[...].astype(jnp.bfloat16)
    h = jnp.dot(x, w1_ref[...], preferred_element_type=jnp.float32)
    h = jnp.maximum(h + b1_ref[...], 0.0)               # f32 epilogue
    y = jnp.dot(h.astype(jnp.bfloat16), w2_ref[...],
                preferred_element_type=jnp.float32)
    o_ref[...] = (y + b2_ref[...]).astype(o_ref.dtype)


def _mlp_kernel_ktiled(x_ref, w1_ref, b1_ref, w2_ref, b2_ref, o_ref, h_acc):
    """Same math with the feature (K) axis tiled; h accumulates in VMEM."""
    k = pl.program_id(1)

    @pl.when(k == 0)
    def _():
        h_acc[...] = jnp.zeros_like(h_acc)

    x = x_ref[...].astype(jnp.bfloat16)
    h_acc[...] += jnp.dot(x, w1_ref[...], preferred_element_type=jnp.float32)

    @pl.when(k == pl.num_programs(1) - 1)
    def _():
        h = jnp.maximum(h_acc[...] + b1_ref[...], 0.0)
        y = jnp.dot(h.astype(jnp.bfloat16), w2_ref[...],
                    preferred_element_type=jnp.float32)
        o_ref[...] = (y + b2_ref[...]).astype(o_ref.dtype)


# ---------------------------------------------------------------------------
# Planning (cheap, deterministic Python; shared by prep and forward)
# ---------------------------------------------------------------------------

def _make_plan(feature_num, hidden_p, out_p, block_batch):
    def vmem_bytes(tb, tk, num_k):
        x_b = 2 * tb * tk * 4                                  # f32 x, 2 bufs
        w1_b = (1 if num_k == 1 else 2) * tk * hidden_p * 2    # bf16
        w2_b = hidden_p * out_p * 2                            # bf16, 1 buf
        out_b = 2 * tb * out_p * 4
        bias_b = 8 * hidden_p * 4 + 8 * out_p * 4              # sublane pad
        acc_b = 0 if num_k == 1 else tb * hidden_p * 4
        return x_b + w1_b + w2_b + out_b + bias_b + acc_b

    tb_max = _round_up(block_batch, BF16_SUBLANES)
    if vmem_bytes(tb_max, feature_num, 1) <= VMEM_BUDGET:
        tk, num_k = feature_num, 1                             # resident w1
    else:
        tk = _round_up(min(feature_num, 4096), LANE)
        while tk > LANE and vmem_bytes(tb_max, tk, 2) > VMEM_BUDGET:
            tk //= 2
        num_k = _cdiv(feature_num, tk)
    feature_p = tk * num_k

    vmem_limit = int(vmem_bytes(tb_max, tk, num_k) * 1.3) + (2 << 20)
    vmem_limit = min(max(vmem_limit, 32 * 1024 * 1024), 64 * 1024 * 1024)
    return {"tk": tk, "num_k": num_k, "feature_p": feature_p,
            "vmem_limit": vmem_limit}


# ---------------------------------------------------------------------------
# One-time weight preparation (pad + bf16 cast) — NOT in the per-call path
# ---------------------------------------------------------------------------

def prepare_params(w1, b1, w2, b2, *, block_batch=DEFAULT_BLOCK_BATCH):
    """Pad/cast the weights once. Accepts 1-D (PyTorch-style) or 2-D biases."""
    w1 = jnp.asarray(w1, jnp.float32)
    w2 = jnp.asarray(w2, jnp.float32)
    b1 = jnp.reshape(jnp.asarray(b1, jnp.float32), (1, -1))
    b2 = jnp.reshape(jnp.asarray(b2, jnp.float32), (1, -1))

    feature_num, hidden = w1.shape
    out_dim = w2.shape[1]

    hidden_p = _round_up(hidden, LANE)
    # Lane-dense output only when x traffic dominates the extra writeback.
    pad_out = feature_num >= 256
    out_p = _round_up(out_dim, LANE) if pad_out else out_dim

    plan = _make_plan(feature_num, hidden_p, out_p, block_batch)
    feature_p = plan["feature_p"]

    # Zero-padding is exact: padded hidden columns are zero through ReLU and
    # multiply zero rows of w2; padded out columns are sliced off.
    w1p = jnp.pad(w1, ((0, feature_p - feature_num), (0, hidden_p - hidden)))
    b1p = jnp.pad(b1, ((0, 0), (0, hidden_p - hidden)))
    w2p = jnp.pad(w2, ((0, hidden_p - hidden), (0, out_p - out_dim)))
    b2p = jnp.pad(b2, ((0, 0), (0, out_p - out_dim)))

    return (w1p.astype(jnp.bfloat16), b1p, w2p.astype(jnp.bfloat16), b2p)


# ---------------------------------------------------------------------------
# Forward
# ---------------------------------------------------------------------------

@functools.partial(jax.jit, static_argnames=("out_dim", "block_batch"))
def net_forward(x, params, *, out_dim=OUT_DIM, block_batch=DEFAULT_BLOCK_BATCH):
    """Pallas forward for Net: relu(x @ W1 + b1) @ W2 + b2."""
    w1p, b1p, w2p, b2p = params
    batch, feature_num = x.shape
    feature_p, hidden_p = w1p.shape
    out_p = w2p.shape[1]

    plan = _make_plan(feature_num, hidden_p, out_p, block_batch)
    assert plan["feature_p"] == feature_p, "params not prepared for this x"
    tk, num_k = plan["tk"], plan["num_k"]

    # Batch tile: multiple of 16 (bf16 sublane packing), sized to minimize
    # padding waste, capped by block_batch.
    n_blk = max(1, _cdiv(batch, block_batch))
    tb = min(_round_up(_cdiv(batch, n_blk), BF16_SUBLANES),
             _round_up(block_batch, BF16_SUBLANES))
    num_blocks = _cdiv(batch, tb)
    batch_p = num_blocks * tb

    # Only the cheap batch/K remainders get padded; the f32->bf16 cast of x
    # happens inside the kernel, so x takes a single HBM pass.
    if batch_p != batch or feature_p != feature_num:
        x = jnp.pad(x, ((0, batch_p - batch), (0, feature_p - feature_num)))

    flops = 2 * batch_p * (feature_p * hidden_p + hidden_p * out_p)
    bytes_accessed = (x.size * x.dtype.itemsize
                      + w1p.size * 2 + w2p.size * 2
                      + b1p.size * 4 + b2p.size * 4
                      + batch_p * out_p * 4)
    cost = pl.CostEstimate(flops=flops, transcendentals=0,
                           bytes_accessed=bytes_accessed)

    # Resident blocks never change -> single pipeline buffer (halves VMEM).
    resident = functools.partial(pl.BlockSpec, pipeline_mode=pl.Buffered(1))

    if num_k == 1:
        grid_spec = pltpu.PrefetchScalarGridSpec(
            num_scalar_prefetch=0,
            grid=(num_blocks,),
            in_specs=[
                pl.BlockSpec((tb, feature_p), lambda i: (i, 0)),       # x
                resident((feature_p, hidden_p), lambda i: (0, 0)),     # w1
                resident((1, hidden_p), lambda i: (0, 0)),             # b1
                resident((hidden_p, out_p), lambda i: (0, 0)),         # w2
                resident((1, out_p), lambda i: (0, 0)),                # b2
            ],
            out_specs=pl.BlockSpec((tb, out_p), lambda i: (i, 0)),
        )
        kernel = _mlp_kernel
        dim_sem = ("parallel",)
    else:
        grid_spec = pltpu.PrefetchScalarGridSpec(
            num_scalar_prefetch=0,
            grid=(num_blocks, num_k),
            in_specs=[
                pl.BlockSpec((tb, tk), lambda i, k: (i, k)),           # x
                pl.BlockSpec((tk, hidden_p), lambda i, k: (k, 0)),     # w1
                resident((1, hidden_p), lambda i, k: (0, 0)),          # b1
                resident((hidden_p, out_p), lambda i, k: (0, 0)),      # w2
                resident((1, out_p), lambda i, k: (0, 0)),             # b2
            ],
            out_specs=pl.BlockSpec((tb, out_p), lambda i, k: (i, 0)),
            scratch_shapes=[pltpu.VMEM((tb, hidden_p), jnp.float32)],
        )
        kernel = _mlp_kernel_ktiled
        dim_sem = ("parallel", "arbitrary")

    out_full = pl.pallas_call(
        kernel,
        out_shape=jax.ShapeDtypeStruct((batch_p, out_p), jnp.float32),
        grid_spec=grid_spec,
        compiler_params=pltpu.CompilerParams(
            dimension_semantics=dim_sem,
            vmem_limit_bytes=plan["vmem_limit"],
        ),
        cost_estimate=cost,
    )(x, w1p, b1p, w2p, b2p)

    return out_full[:batch, :out_dim]


# ---------------------------------------------------------------------------
# Demo / self-test
# ---------------------------------------------------------------------------

if __name__ == "__main__":
    key = jax.random.PRNGKey(0)
    k_x, k1, k2, k3, k4 = jax.random.split(key, 5)

    batch = 8
    feature_num = 32

    # PyTorch nn.Linear default init: U(-1/sqrt(fan_in), 1/sqrt(fan_in)).
    bound1 = 1.0 / feature_num ** 0.5
    bound2 = 1.0 / HIDDEN ** 0.5
    w1 = jax.random.uniform(k1, (feature_num, HIDDEN), jnp.float32, -bound1, bound1)
    b1 = jax.random.uniform(k2, (HIDDEN,), jnp.float32, -bound1, bound1)   # 1-D (PyTorch)
    w2 = jax.random.uniform(k3, (HIDDEN, OUT_DIM), jnp.float32, -bound2, bound2)
    b2 = jax.random.uniform(k4, (OUT_DIM,), jnp.float32, -bound2, bound2)

    x = jax.random.normal(k_x, (batch, feature_num), jnp.float32)

    params = prepare_params(w1, b1, w2, b2)          # one-time pad + bf16 cast
    out = jax.block_until_ready(net_forward(x, params))
    assert out.shape == (batch, OUT_DIM)

    # Reference matching the kernel's bf16-input / f32-accumulate MXU path.
    w1b, w2b = w1.astype(jnp.bfloat16), w2.astype(jnp.bfloat16)
    h_ref = jnp.maximum(
        jnp.dot(x.astype(jnp.bfloat16), w1b,
                preferred_element_type=jnp.float32) + b1[None, :], 0.0)
    ref = jnp.dot(h_ref.astype(jnp.bfloat16), w2b,
                  preferred_element_type=jnp.float32) + b2[None, :]
    assert jnp.allclose(out, ref, atol=2e-3, rtol=2e-3)

    # Also close to the full-f32 math of the PyTorch module.
    ref_f32 = jnp.maximum(x @ w1 + b1[None, :], 0.0) @ w2 + b2[None, :]
    assert jnp.allclose(out, ref_f32, atol=5e-2, rtol=5e-2)

    print("KERNEL_OK")
</pallas_src>

<mosaic_0001>
module attributes {stable_mosaic.version = 11 : i64} {
  func.func @_mlp_kernel(%arg0: i32, %arg1: memref<16x32xf32, #tpu.memory_space<vmem>>, %arg2: memref<32x512xbf16, #tpu.memory_space<vmem>>, %arg3: memref<1x512xf32, #tpu.memory_space<vmem>>, %arg4: memref<512x20xbf16, #tpu.memory_space<vmem>>, %arg5: memref<1x20xf32, #tpu.memory_space<vmem>>, %arg6: memref<16x20xf32, #tpu.memory_space<vmem>>) attributes {dimension_semantics = [#tpu.dimension_semantics<parallel>], iteration_bounds = array<i64: 1>, scalar_prefetch = 0 : i64, scratch_operands = 0 : i64, tpu.core_type = #tpu.core_type<tc>, window_params = [{transform_indices = @transform_0, window_bounds = array<i64: 16, 32>}, {pipeline_mode = #tpu.pipeline_mode<synchronous>, transform_indices = @transform_1, window_bounds = array<i64: 32, 512>}, {pipeline_mode = #tpu.pipeline_mode<synchronous>, transform_indices = @transform_2, window_bounds = array<i64: 1, 512>}, {pipeline_mode = #tpu.pipeline_mode<synchronous>, transform_indices = @transform_3, window_bounds = array<i64: 512, 20>}, {pipeline_mode = #tpu.pipeline_mode<synchronous>, transform_indices = @transform_4, window_bounds = array<i64: 1, 20>}, {transform_indices = @transform_5, window_bounds = array<i64: 16, 20>}]} {
    %c0 = arith.constant 0 : index
    %c0_0 = arith.constant 0 : index
    %0 = vector.load %arg1[%c0, %c0_0] : memref<16x32xf32, #tpu.memory_space<vmem>>, vector<16x32xf32>
    %1 = arith.truncf %0 : vector<16x32xf32> to vector<16x32xbf16>
    %c0_1 = arith.constant 0 : index
    %c0_2 = arith.constant 0 : index
    %2 = vector.load %arg2[%c0_1, %c0_2] : memref<32x512xbf16, #tpu.memory_space<vmem>>, vector<32x512xbf16>
    %cst = arith.constant dense<0.000000e+00> : vector<16x512xf32>
    %3 = tpu.matmul %1, %2, %cst {dimension_numbers = #tpu.dot_dimension_numbers<[1], [0], [0], [1], [0, 0, 1, 1], [], []>} : vector<16x32xbf16>, vector<32x512xbf16>, vector<16x512xf32> -> vector<16x512xf32>
    %c0_3 = arith.constant 0 : index
    %c0_4 = arith.constant 0 : index
    %4 = vector.load %arg3[%c0_3, %c0_4] : memref<1x512xf32, #tpu.memory_space<vmem>>, vector<1x512xf32>
    %5 = vector.broadcast %4 : vector<1x512xf32> to vector<16x512xf32>
    %6 = arith.addf %3, %5 : vector<16x512xf32>
    %cst_5 = arith.constant 0.000000e+00 : f32
    %7 = vector.broadcast %cst_5 : f32 to vector<16x512xf32>
    %8 = arith.maximumf %6, %7 : vector<16x512xf32>
    %9 = arith.truncf %8 : vector<16x512xf32> to vector<16x512xbf16>
    %c0_6 = arith.constant 0 : index
    %c0_7 = arith.constant 0 : index
    %10 = vector.load %arg4[%c0_6, %c0_7] : memref<512x20xbf16, #tpu.memory_space<vmem>>, vector<512x20xbf16>
    %cst_8 = arith.constant dense<0.000000e+00> : vector<16x20xf32>
    %11 = tpu.matmul %9, %10, %cst_8 {dimension_numbers = #tpu.dot_dimension_numbers<[1], [0], [0], [1], [0, 0, 1, 1], [], []>} : vector<16x512xbf16>, vector<512x20xbf16>, vector<16x20xf32> -> vector<16x20xf32>
    %c0_9 = arith.constant 0 : index
    %c0_10 = arith.constant 0 : index
    %12 = vector.load %arg5[%c0_9, %c0_10] : memref<1x20xf32, #tpu.memory_space<vmem>>, vector<1x20xf32>
    %13 = vector.broadcast %12 : vector<1x20xf32> to vector<16x20xf32>
    %14 = arith.addf %11, %13 : vector<16x20xf32>
    %c0_11 = arith.constant 0 : index
    %c0_12 = arith.constant 0 : index
    %15 = vector.load %arg6[%c0_11, %c0_12] : memref<16x20xf32, #tpu.memory_space<vmem>>, vector<16x20xf32>
    tpu.vector_store %arg6[%c0_11, %c0_12], %14 {strides = array<i32>} : memref<16x20xf32, #tpu.memory_space<vmem>>, vector<16x20xf32>,
    return
  }
  func.func @transform_0(%arg0: i32) -> (i32, i32) {
    %c0_i32 = arith.constant 0 : i32
    %c0_i32_0 = arith.constant 0 : i32
    return %arg0, %c0_i32 : i32, i32
  }
  func.func @transform_1(%arg0: i32) -> (i32, i32) {
    %c0_i32 = arith.constant 0 : i32
    %c0_i32_0 = arith.constant 0 : i32
    %c0_i32_1 = arith.constant 0 : i32
    return %c0_i32, %c0_i32_0 : i32, i32
  }
  func.func @transform_2(%arg0: i32) -> (i32, i32) {
    %c0_i32 = arith.constant 0 : i32
    %c0_i32_0 = arith.constant 0 : i32
    %c0_i32_1 = arith.constant 0 : i32
    return %c0_i32, %c0_i32_0 : i32, i32
  }
  func.func @transform_3(%arg0: i32) -> (i32, i32) {
    %c0_i32 = arith.constant 0 : i32
    %c0_i32_0 = arith.constant 0 : i32
    %c0_i32_1 = arith.constant 0 : i32
    return %c0_i32, %c0_i32_0 : i32, i32
  }
  func.func @transform_4(%arg0: i32) -> (i32, i32) {
    %c0_i32 = arith.constant 0 : i32
    %c0_i32_0 = arith.constant 0 : i32
    %c0_i32_1 = arith.constant 0 : i32
    return %c0_i32, %c0_i32_0 : i32, i32
  }
  func.func @transform_5(%arg0: i32) -> (i32, i32) {
    %c0_i32 = arith.constant 0 : i32
    %c0_i32_0 = arith.constant 0 : i32
    return %arg0, %c0_i32 : i32, i32
  }
}

</mosaic_0001>

<bundles_post_ra>
// kernel: net_forward.1
= control target key start
LH: loop header
LB: loop body
LE: loop exit
PB: predicated region body
PF: predicated region fallthrough
CT: control target
= control target key end

     0   :  { %v680_v1 = vmov 0   ;;  %vm94_vm0 = vcmask 261120   ;;  %v34_v44 = vlaneseq  ;;  %vm541_vm1 = vcmask 162816   ;;  %s849_s1 = inlined_call_operand.vmem [shape: bf16[32,512], index: 1, kind: input, shape index: {}]   ;;  %s850_s0 = inlined_call_operand.vmem [shape: f32[16,32], index: 0, kind: input, shape index: {}]   ;;  %s851_s3 = inlined_call_operand.vmem [shape: bf16[512,20], index: 3, kind: input, shape index: {}]   ;;  %s852_s2 = inlined_call_operand.vmem [shape: f32[1,512], index: 2, kind: input, shape index: {}]   ;;  %s853_s4 = inlined_call_operand.vmem [shape: f32[1,20], index: 4, kind: input, shape index: {}]   ;;  %s854_s5 = inlined_call_operand.vmem [shape: f32[16,20], index: 5, kind: output, shape index: {}]  }
   0x1   :  { %v636_v0 = vld [vmem:[%s849_s1 + $0x4] ss:$16 sps:$4 sm:$0xff]   ;;  %130 = vmatprep.mubr.bf16.mxu0 %v680_v1  ;;  %173 = vmatprep.mubr.bf16.mxu1 %v680_v1  ;;  %v638_v2 = vld [vmem:[%s849_s1 + $0xc] ss:$16 sps:$4 sm:$0xff]   ;;  %v640_v3 = vld [vmem:[%s849_s1] ss:$16 sps:$4 sm:$0xff]  }
   0x2   :  { %98 = vmatprep.subr.bf16.mxu0 %v636_v0  ;;  %v641_v4 = vld [vmem:[%s849_s1 + $0x8] ss:$16 sps:$4 sm:$0xff]   ;;  %141 = vmatprep.subr.bf16.mxu1 %v638_v2  ;;  %v642_v5 = vld [vmem:[%s849_s1 + $0x24] ss:$16 sps:$4 sm:$0xff]   ;;  %v644_v6 = vld [vmem:[%s849_s1 + $0x2c] ss:$16 sps:$4 sm:$0xff]  }
   0x3   :  { %99 = vmatpush1.bf16.msra.mxu0 %v640_v3  ;;  %142 = vmatpush1.bf16.msra.mxu1 %v641_v4  ;;  %v646_v7 = vld [vmem:[%s849_s1 + $0x20] ss:$16 sps:$4 sm:$0xff]   ;;  %v647_v8 = vld [vmem:[%s849_s1 + $0x28] ss:$16 sps:$4 sm:$0xff]   ;;  %v35_v45 = vshrl.u32 %v34_v44, 7 }
   0x4   :  { %100 = vmatprep.subr.bf16.mxu0 %v642_v5  ;;  %v21_v9 = vld [vmem:[%s850_s0] sm:$0xff]  ;;  %v22_v10 = vld [vmem:[%s850_s0 + $0x8] sm:$0xff]  ;;  %143 = vmatprep.subr.bf16.mxu1 %v644_v6  ;;  %v656_v20 = vld [vmem:[%s851_s3 + $0x50] sm:$0xff]  }
   0x5   :  { %v648_v11 = vld [vmem:[%s851_s3 + $0x40] sm:$0xff]   ;;  %v23_v12 = vpack.c.bf16 %v22_v10, %v21_v9  ;;  %v652_v16 = vld [vmem:[%s851_s3 + $0x48] sm:$0xff]   ;;  %v657_v21 = vld [vmem:[%s851_s3 + $0xd0] sm:$0xff]   ;;  %v36_v46 = vsub.s32 0, %v35_v45  ;;  %v44_v47 = vsub.s32 2, %v35_v45  ;;  %v40_v49 = vsub.s32 1, %v35_v45 }
   0x6   :  { %v649_v13 = vld [vmem:[%s851_s3 + $0xc0] sm:$0xff]   ;;  %v653_v17 = vld [vmem:[%s851_s3 + $0xc8] sm:$0xff]   ;;  %v658_v22 = vld [vmem:[%s851_s3 + $0x10] sm:$0xff]   ;;  %v48_v50 = vsub.s32 3, %v35_v45 }
   0x7   :  { %101 = vmatpush1.bf16.msra.mxu0 %v646_v7  ;;  %144 = vmatpush1.bf16.msra.mxu1 %v647_v8  ;;  %v650_v14 = vld [vmem:[%s851_s3] sm:$0xff]   ;;  %v654_v18 = vld [vmem:[%s851_s3 + $0x8] sm:$0xff]   ;;  %v659_v23 = vld [vmem:[%s851_s3 + $0x90] sm:$0xff]  }
   0x8   :  { %591 = vmatprep.subr.bf16.mxu0 %v648_v11  ;;  %613 = vmatprep.subr.bf16.mxu1 %v649_v13  ;;  %v651_v15 = vld [vmem:[%s851_s3 + $0x80] sm:$0xff]   ;;  %v655_v19 = vld [vmem:[%s851_s3 + $0x88] sm:$0xff]   ;;  %v660_v24 = vld [vmem:[%s851_s3 + $0x58] sm:$0xff]  }
   0x9   :  { %v661_v25 = vld [vmem:[%s851_s3 + $0xd8] sm:$0xff]   ;;  %v664_v28 = vld [vmem:[%s851_s3 + $0x60] sm:$0xff]   ;;  %v668_v32 = vld [vmem:[%s851_s3 + $0x68] sm:$0xff]  }
   0xa   :  { %556 = vmatmul.mubr.msk.bf16.vlgmr.msra.gmra.mrb[0].mxu0 %vm94_vm0, %v23_v12  ;;  %557 = vmatmul.mubr.msk.bf16.vlgmr.msra.gmra.mrb[0].mxu1 %vm94_vm0, %v23_v12  ;;  %v662_v26 = vld [vmem:[%s851_s3 + $0x18] sm:$0xff]   ;;  %v665_v29 = vld [vmem:[%s851_s3 + $0xe0] sm:$0xff]   ;;  %v669_v33 = vld [vmem:[%s851_s3 + $0xe8] sm:$0xff]  }
   0xb   :  { %592 = vmatpush3.bf16.msra.mxu0 %v650_v14  ;;  %614 = vmatpush3.bf16.msra.mxu1 %v651_v15  ;;  %v663_v27 = vld [vmem:[%s851_s3 + $0x98] sm:$0xff]   ;;  %v666_v30 = vld [vmem:[%s851_s3 + $0x20] sm:$0xff]   ;;  %v670_v34 = vld [vmem:[%s851_s3 + $0x28] sm:$0xff]  }
   0xc   :  { %593 = vmatprep.subr.bf16.mxu0 %v652_v16  ;;  %615 = vmatprep.subr.bf16.mxu1 %v653_v17  ;;  %v667_v31 = vld [vmem:[%s851_s3 + $0xa0] sm:$0xff]   ;;  %v671_v35 = vld [vmem:[%s851_s3 + $0xa8] sm:$0xff]   ;;  %v672_v36 = vld [vmem:[%s851_s3 + $0x70] sm:$0xff]  }
   0xd   :  { %v673_v37 = vld [vmem:[%s851_s3 + $0xf0] sm:$0xff]   ;;  %v676_v40 = vld [vmem:[%s851_s3 + $0x78] sm:$0xff]   ;;  %v32_v48 = vld [vmem:[%s852_s2] sm:$0xf] }
   0xe   :  { %v674_v38 = vld [vmem:[%s851_s3 + $0x30] sm:$0xff]   ;;  %v677_v41 = vld [vmem:[%s851_s3 + $0xf8] sm:$0xff]   ;;  %v37_v51 = vrot.slane %v32_v48, %v36_v46  ;;  %v45_v52 = vrot.slane %v32_v48, %v44_v47  ;;  %v41_v53 = vrot.slane %v32_v48, %v40_v49  ;;  %v49_v54 = vrot.slane %v32_v48, %v48_v50 }
   0xf   :  { %594 = vmatpush3.bf16.msra.mxu0 %v654_v18  ;;  %616 = vmatpush3.bf16.msra.mxu1 %v655_v19  ;;  %v675_v39 = vld [vmem:[%s851_s3 + $0xb0] sm:$0xff]   ;;  %v678_v42 = vld [vmem:[%s851_s3 + $0x38] sm:$0xff]  }
  0x10   :  { %595 = vmatprep.subr.bf16.mxu0 %v656_v20  ;;  %617 = vmatprep.subr.bf16.mxu1 %v657_v21  ;;  %v679_v43 = vld [vmem:[%s851_s3 + $0xb8] sm:$0xff]   ;;  %v558_v21 = vld [vmem:[%s853_s4] ss:$0 sm:$0xff] }
  0x13   :  { %596 = vmatpush3.bf16.msra.mxu0 %v658_v22  ;;  %618 = vmatpush3.bf16.msra.mxu1 %v659_v23 }
  0x14   :  { %597 = vmatprep.subr.bf16.mxu0 %v660_v24  ;;  %619 = vmatprep.subr.bf16.mxu1 %v661_v25 }
  0x17   :  { %598 = vmatpush3.bf16.msra.mxu0 %v662_v26  ;;  %620 = vmatpush3.bf16.msra.mxu1 %v663_v27 }
  0x18   :  { %599 = vmatprep.subr.bf16.mxu0 %v664_v28  ;;  %621 = vmatprep.subr.bf16.mxu1 %v665_v29 }
  0x1b   :  { %600 = vmatpush3.bf16.msra.mxu0 %v666_v30  ;;  %622 = vmatpush3.bf16.msra.mxu1 %v667_v31 }
  0x1c   :  { %601 = vmatprep.subr.bf16.mxu0 %v668_v32  ;;  %623 = vmatprep.subr.bf16.mxu1 %v669_v33 }
  0x1f   :  { %602 = vmatpush3.bf16.msra.mxu0 %v670_v34  ;;  %624 = vmatpush3.bf16.msra.mxu1 %v671_v35 }
  0x20   :  { %603 = vmatprep.subr.bf16.mxu0 %v672_v36  ;;  %625 = vmatprep.subr.bf16.mxu1 %v673_v37 }
  0x23   :  { %604 = vmatpush3.bf16.msra.mxu0 %v674_v38  ;;  %626 = vmatpush3.bf16.msra.mxu1 %v675_v39 }
  0x24   :  { %605 = vmatprep.subr.bf16.mxu0 %v676_v40  ;;  %627 = vmatprep.subr.bf16.mxu1 %v677_v41 }
  0x27   :  { %606 = vmatpush3.bf16.msra.mxu0 %v678_v42  ;;  %628 = vmatpush3.bf16.msra.mxu1 %v679_v43 }
  0xdd   :  { %v132_v55 = vpop.f32.mrb[0].mxu0  ;;  %v175_v56 = vpop.f32.mrb[0].mxu1 }
  0xde   :  { %v133_v57 = vadd.f32 %v132_v55, %v37_v51  ;;  %v176_v58 = vadd.f32 %v175_v56, %v45_v52  ;;  %v134_v59 = vpop.f32.mrb[1].mxu0  ;;  %v177_v60 = vpop.f32.mrb[1].mxu1 }
  0xdf   :  { %v135_v61 = vadd.f32 %v134_v59, %v41_v53  ;;  %v178_v62 = vadd.f32 %v177_v60, %v49_v54  ;;  %v136_v63 = vpop.f32.mrb[2].mxu0  ;;  %v179_v0 = vpop.f32.mrb[2].mxu1 }
  0xe0   :  { %v186_v1 = vmax.f32 %v176_v58, 0.0  ;;  %v137_v2 = vadd.f32 %v136_v63, %v37_v51  ;;  %v180_v3 = vadd.f32 %v179_v0, %v45_v52  ;;  %v138_v4 = vpop.f32.mrb[3].mxu0  ;;  %v181_v5 = vpop.f32.mrb[3].mxu1  ;;  %v184_v9 = vmax.f32 %v133_v57, 0.0 }
  0xe1   :  { %v187_v6 = vmax.f32 %v178_v62, 0.0  ;;  %v139_v7 = vadd.f32 %v138_v4, %v41_v53  ;;  %v182_v8 = vadd.f32 %v181_v5, %v49_v54  ;;  %v185_v12 = vmax.f32 %v135_v61, 0.0 }
  0xe2   :  { %v188_v10 = vmax.f32 %v137_v2, 0.0  ;;  %v190_v11 = vmax.f32 %v180_v3, 0.0 }
  0xe3   :  { %v189_v13 = vmax.f32 %v139_v7, 0.0  ;;  %v191_v14 = vmax.f32 %v182_v8, 0.0 }
  0xe4   :  { %v192_v15 = vpack.c.bf16 %v188_v10, %v184_v9  ;;  %v194_v16 = vpack.c.bf16 %v190_v11, %v186_v1 }
  0xe5   :  { %v193_v17 = vpack.c.bf16 %v189_v13, %v185_v12  ;;  %v195_v18 = vpack.c.bf16 %v191_v14, %v187_v6 }
  0xe7   :  { %491 = vmatprep.mubr.bf16.mxu0 %v193_v17  ;;  %532 = vmatprep.mubr.bf16.mxu1 %v195_v18 }
  0xe8   :  { %492 = vmatmul.mubr.bf16.vlgmr.msra.gmra.mrb[4].mxu0 %v192_v15  ;;  %533 = vmatmul.mubr.bf16.vlgmr.msra.gmra.mrb[4].mxu1 %v194_v16 }
 0x1bb   :  { %v607_v19 = vpop.f32.mrb[4].mxu0  ;;  %v629_v20 = vpop.f32.mrb[4].mxu1 }
 0x1bc   :  { %v608_v22 = vpop.f32.mrb[5].mxu0  ;;  %v630_v23 = vpop.f32.mrb[5].mxu1 }
 0x1bd   :  { %v609_v24 = vadd.f32 %v608_v22, %v607_v19  ;;  %v631_v25 = vadd.f32 %v630_v23, %v629_v20  ;;  %v610_v26 = vpop.f32.mrb[6].mxu0  ;;  %v632_v27 = vpop.f32.mrb[6].mxu1 }
 0x1be   :  { %v611_v28 = vpop.f32.mrb[7].mxu0  ;;  %v633_v29 = vpop.f32.mrb[7].mxu1 }
 0x1bf   :  { %v494_v30 = vadd.f32 %v609_v24, %v558_v21  ;;  %v612_v31 = vadd.f32 %v611_v28, %v610_v26  ;;  %v634_v32 = vadd.f32 %v633_v29, %v632_v27 }
 0x1c1   :  { %v535_v33 = vadd.f32 %v631_v25, %v494_v30  ;;  %v497_v34 = vadd.f32 %v612_v31, %v558_v21 }
 0x1c3   :  { %542 = vst.msk [vmem:[%s854_s5] sm:$0xff] %vm541_vm1, %v535_v33  ;;  %v538_v35 = vadd.f32 %v634_v32, %v497_v34 }
 0x1c5   :  { %543 = vst.msk [vmem:[%s854_s5 + $0x8] sm:$0xff] %vm541_vm1, %v538_v35 }

</bundles_post_ra>
